<compile_context>
chip_gen: v7x
topology: tpu7x:2x2x1
jax: 0.10.0
libtpu: 0.0.40
codegen_flags: <defaults>
</compile_context>

<pallas_src>
import functools

import jax
import jax.numpy as jnp
import numpy as np
from jax.experimental import pallas as pl
from jax.experimental.pallas import tpu as pltpu

_LANE = 128


def _vmem_capacity_bytes():
    try:
        return int(pltpu.get_tpu_info().vmem_capacity_bytes)
    except Exception:
        return 64 << 20                       # conservative (v7x-sized) fallback


def _dice_kernel(x_ref, y_ref, tp_ref, sxy_ref, tp_acc, sxy_acc, *,
                 s_tile, s_total, n_k, k_grid, need_mask):
    """Grid: (spatial split, row block, spatial tile).  Axis 2 is the reduction."""
    sp = pl.program_id(0)
    k = pl.program_id(2)
    gk = sp * k_grid + k                      # global spatial-tile index (int32)

    @pl.when(k == 0)
    def _():
        tp_acc[...] = jnp.zeros_like(tp_acc)
        sxy_acc[...] = jnp.zeros_like(sxy_acc)

    def accumulate(mask_tail):
        # Native-dtype tile streamed from HBM; cast per tile, accumulate in f32.
        x = x_ref[...].astype(jnp.float32)    # (row_tile, s_tile)
        y = y_ref[...].astype(jnp.float32)
        if mask_tail:
            # The overhang of the last tile holds unspecified data; use a
            # select (not a multiply) so NaN/Inf garbage cannot poison sums.
            col = jax.lax.broadcasted_iota(jnp.int32, x.shape, 1)
            valid = (gk * s_tile + col) < s_total
            x = jnp.where(valid, x, 0.0)
            y = jnp.where(valid, y, 0.0)
        # tp = sum(x*y); 2*tp + fp + fn == sum(x) + sum(y)
        tp_acc[...] += jnp.sum(x * y, axis=-1, keepdims=True)
        sxy_acc[...] += jnp.sum(x + y, axis=-1, keepdims=True)

    if need_mask:
        # Keep the hot path lean: only the last real tile pays for the mask.
        @pl.when(gk < n_k - 1)
        def _():
            accumulate(False)

        @pl.when(gk == n_k - 1)
        def _():
            accumulate(True)
    else:
        accumulate(False)

    @pl.when(k == pl.num_programs(2) - 1)
    def _():
        tp_ref[...] = tp_acc[...][None]       # (1, row_tile, 1)
        sxy_ref[...] = sxy_acc[...][None]


def _pick_row_tile(bc, min_itemsize):
    # Match native sublane packing: a bf16 vreg is (16,128), int8 (32,128),
    # f32 (8,128).  Fall back to the full row extent (allowed when block dim
    # equals the array dim).
    preferred = min(32, 8 * max(1, 4 // max(1, min_itemsize)))
    cand = preferred
    while cand >= 8:
        if bc >= cand and bc % cand == 0:
            return cand
        cand //= 2
    return bc


def _pick_s_tile(row_tile, s, x_item, y_item, vmem_cap, max_s_tile):
    if vmem_cap >= (100 << 20):               # 128 MiB parts: v5e / v6e
        budget = 64 << 20                     # live double-buffered inputs + slack
        max_block_bytes = 8 << 20             # per-input per-step DMA granule
    else:                                     # 64 MiB parts: v7x
        budget = 24 << 20
        max_block_bytes = 4 << 20
    # Bytes per spatial lane held live: two pipeline buffers of each native
    # input plus a small f32 working-set allowance (elementwise cast/mul/add
    # fuse per-vreg into the reduction; no full-tile f32 copies materialize).
    per_lane = row_tile * (2 * (x_item + y_item) + 2 * 4)
    cap = min(budget // per_lane,
              max_block_bytes // (row_tile * max(x_item, y_item)))
    if max_s_tile is not None:
        cap = min(cap, max_s_tile)
    cap = max(_LANE, cap)
    if s <= cap:
        return s                              # single full-extent spatial tile
    return max(_LANE, (cap // _LANE) * _LANE)


def _dice_partial_sums(x2d, y2d, max_s_tile=None):
    """x2d, y2d: (BC, S) in native dtype.  Returns (tp, sxy), each (BC,) f32."""
    bc, s = x2d.shape
    x_item = jnp.dtype(x2d.dtype).itemsize
    y_item = jnp.dtype(y2d.dtype).itemsize
    vmem_cap = _vmem_capacity_bytes()

    row_tile = _pick_row_tile(bc, min(x_item, y_item))
    n_row = bc // row_tile
    s_tile = _pick_s_tile(row_tile, s, x_item, y_item, vmem_cap, max_s_tile)
    n_k = pl.cdiv(s, s_tile)

    # v7x megacore: with a single row block, split the spatial axis in two
    # (even tile counts only) so both TensorCores stream half of HBM.  If the
    # count is odd, nudge the tile size down to make it even when possible.
    n_splits = 1
    if n_row == 1 and n_k >= 4:
        if n_k % 2 != 0:
            cand = pl.cdiv(pl.cdiv(s, n_k + 1), _LANE) * _LANE
            if _LANE <= cand < s and pl.cdiv(s, cand) % 2 == 0:
                s_tile = cand
                n_k = pl.cdiv(s, cand)
        if n_k % 2 == 0:
            n_splits = 2
    k_grid = n_k // n_splits
    need_mask = (s % s_tile) != 0

    kernel = functools.partial(
        _dice_kernel, s_tile=s_tile, s_total=s, n_k=n_k, k_grid=k_grid,
        need_mask=need_mask)

    vmem_limit = (96 << 20) if vmem_cap >= (100 << 20) else (48 << 20)
    cost = pl.CostEstimate(
        flops=4 * bc * s, transcendentals=0,
        bytes_accessed=bc * s * (x_item + y_item) + 2 * n_splits * bc * 4)

    def in_map(sp, r, k):
        return (r, sp * k_grid + k)

    tp, sxy = pl.pallas_call(
        kernel,
        out_shape=(jax.ShapeDtypeStruct((n_splits, bc, 1), jnp.float32),
                   jax.ShapeDtypeStruct((n_splits, bc, 1), jnp.float32)),
        grid_spec=pltpu.PrefetchScalarGridSpec(
            num_scalar_prefetch=0,
            grid=(n_splits, n_row, k_grid),
            in_specs=[
                pl.BlockSpec((row_tile, s_tile), in_map),
                pl.BlockSpec((row_tile, s_tile), in_map),
            ],
            out_specs=(
                pl.BlockSpec((1, row_tile, 1), lambda sp, r, k: (sp, r, 0)),
                pl.BlockSpec((1, row_tile, 1), lambda sp, r, k: (sp, r, 0)),
            ),
            scratch_shapes=[
                pltpu.VMEM((row_tile, 1), jnp.float32),
                pltpu.VMEM((row_tile, 1), jnp.float32),
            ],
        ),
        compiler_params=pltpu.CompilerParams(
            dimension_semantics=("parallel", "parallel", "arbitrary"),
            vmem_limit_bytes=vmem_limit),
        cost_estimate=cost,
    )(x2d, y2d)

    # Combine per-split partials (tiny) outside the kernel.
    return jnp.sum(tp, axis=0)[:, 0], jnp.sum(sxy, axis=0)[:, 0]


def soft_dice_loss(inp, target, *, do_bg=False, batch_dice=False,
                   smooth_nom=1e-5, smooth_denom=1e-5, max_s_tile=None):
    """SoftDiceLoss.forward with nonlin=None and loss_mask=None.

    inp, target: (B, C, *spatial), same shape (target already one-hot), any
    float/int dtype -- streamed in the native dtype, accumulated in f32.
    `max_s_tile` is an optional tuning/testing cap on the spatial tile width.
    """
    # TODO(synk): batch_dice=True path and loss_mask support not implemented
    # (module defaults used); nonlin is None by default so no activation here.
    # TODO(synk): when do_bg=False the background channel is still streamed;
    # skipping it needs a (C-1)-compatible row blocking (scalar-prefetch row
    # table), which conflicts with the 8/16-row sublane packing for C=2..8.
    assert inp.shape == target.shape
    assert not batch_dice
    b, c = int(inp.shape[0]), int(inp.shape[1])
    s = int(np.prod(inp.shape[2:]))

    # Contiguous reshape -> free bitcast in XLA; no dtype cast, no padding.
    x2d = inp.reshape(b * c, s)
    y2d = target.reshape(b * c, s)

    tp, sxy = _dice_partial_sums(x2d, y2d, max_s_tile=max_s_tile)
    dc = (2.0 * tp + smooth_nom) / (sxy + smooth_denom)
    dc = dc.reshape(b, c)
    if not do_bg:
        dc = dc[:, 1:]
    return 1.0 - jnp.mean(dc)


def _reference_soft_dice_loss(inp, target, smooth_nom=1e-5, smooth_denom=1e-5):
    """Pure-JAX reference mirroring the PyTorch module (defaults)."""
    axes = tuple(range(2, inp.ndim))
    x = inp.astype(jnp.float32)
    y = target.astype(jnp.float32)
    tp = jnp.sum(x * y, axis=axes)
    fp = jnp.sum(x * (1.0 - y), axis=axes)
    fn = jnp.sum((1.0 - x) * y, axis=axes)
    dc = (2.0 * tp + smooth_nom) / (2.0 * tp + fp + fn + smooth_denom)
    dc = dc[:, 1:]            # do_bg=False
    return 1.0 - jnp.mean(dc)


if __name__ == "__main__":
    def make_case(key, b, c, h, w, dtype):
        k_inp, k_tgt = jax.random.split(key)
        logits = jax.random.normal(k_inp, (b, c, h, w), dtype=jnp.float32)
        inp = jax.nn.softmax(logits, axis=1).astype(dtype)
        labels = jax.random.randint(k_tgt, (b, h, w), 0, c)
        target = jax.nn.one_hot(labels, c, axis=1, dtype=dtype)   # (B,C,H,W)
        return inp, target

    key = jax.random.PRNGKey(0)
    keys = jax.random.split(key, 5)
    # max_s_tile overrides are used only to exercise the tiling / split /
    # tail-mask paths at small test shapes; production shapes hit them
    # naturally with the VMEM-derived tile sizes.
    cases = [
        (make_case(keys[0], 2, 4, 16, 16, jnp.bfloat16), None),   # single tile
        (make_case(keys[1], 2, 5, 17, 17, jnp.bfloat16), None),   # odd B*C, full-extent rows
        (make_case(keys[2], 2, 8, 16, 16, jnp.float32), None),    # row-blocked f32
        (make_case(keys[3], 2, 4, 33, 31, jnp.bfloat16), 128),    # 2-way spatial split + ragged tail
        (make_case(keys[4], 2, 5, 17, 17, jnp.bfloat16), 128),    # ragged tail, no split (odd tiles)
    ]

    for (inp, target), cap in cases:
        loss_fn = jax.jit(functools.partial(soft_dice_loss, max_s_tile=cap))
        loss = jax.block_until_ready(loss_fn(inp, target))
        ref = _reference_soft_dice_loss(inp, target)
        np.testing.assert_allclose(np.asarray(loss), np.asarray(ref),
                                   rtol=2e-5, atol=2e-6)

    print("KERNEL_OK")
</pallas_src>

<mosaic_0001>
module attributes {stable_mosaic.version = 11 : i64} {
  func.func @_dice_kernel(%arg0: i32, %arg1: i32, %arg2: i32, %arg3: memref<8x256xbf16, #tpu.memory_space<vmem>>, %arg4: memref<8x256xbf16, #tpu.memory_space<vmem>>, %arg5: memref<1x8x1xf32, #tpu.memory_space<vmem>>, %arg6: memref<1x8x1xf32, #tpu.memory_space<vmem>>, %arg7: memref<8x1xf32, #tpu.memory_space<vmem>>, %arg8: memref<8x1xf32, #tpu.memory_space<vmem>>) attributes {dimension_semantics = [#tpu.dimension_semantics<parallel>, #tpu.dimension_semantics<parallel>, #tpu.dimension_semantics<arbitrary>], iteration_bounds = array<i64: 1, 1, 1>, scalar_prefetch = 0 : i64, scratch_operands = 2 : i64, tpu.core_type = #tpu.core_type<tc>, window_params = [{transform_indices = @transform_0, window_bounds = array<i64: 8, 256>}, {transform_indices = @transform_1, window_bounds = array<i64: 8, 256>}, {transform_indices = @transform_2, window_bounds = array<i64: 1, 8, 1>}, {transform_indices = @transform_3, window_bounds = array<i64: 1, 8, 1>}]} {
    %c0_i32 = arith.constant 0 : i32
    %0 = arith.cmpi eq, %arg2, %c0_i32 : i32
    %1 = arith.extui %0 : i1 to i32
    %c0_i32_0 = arith.constant 0 : i32
    %2 = arith.cmpi ne, %1, %c0_i32_0 : i32
    scf.if %2 {
      %cst_15 = arith.constant 0.000000e+00 : f32
      %22 = vector.broadcast %cst_15 : f32 to vector<8x1xf32>
      %c0_16 = arith.constant 0 : index
      %c0_17 = arith.constant 0 : index
      %23 = vector.load %arg7[%c0_16, %c0_17] : memref<8x1xf32, #tpu.memory_space<vmem>>, vector<8x1xf32>
      tpu.vector_store %arg7[%c0_16, %c0_17], %22 {strides = array<i32>} : memref<8x1xf32, #tpu.memory_space<vmem>>, vector<8x1xf32>,
      %cst_18 = arith.constant 0.000000e+00 : f32
      %24 = vector.broadcast %cst_18 : f32 to vector<8x1xf32>
      %c0_19 = arith.constant 0 : index
      %c0_20 = arith.constant 0 : index
      %25 = vector.load %arg8[%c0_19, %c0_20] : memref<8x1xf32, #tpu.memory_space<vmem>>, vector<8x1xf32>
      tpu.vector_store %arg8[%c0_19, %c0_20], %24 {strides = array<i32>} : memref<8x1xf32, #tpu.memory_space<vmem>>, vector<8x1xf32>,
    } else {
    }
    %c0 = arith.constant 0 : index
    %c0_1 = arith.constant 0 : index
    %3 = vector.load %arg3[%c0, %c0_1] : memref<8x256xbf16, #tpu.memory_space<vmem>>, vector<8x256xbf16>
    %4 = arith.extf %3 : vector<8x256xbf16> to vector<8x256xf32>
    %c0_2 = arith.constant 0 : index
    %c0_3 = arith.constant 0 : index
    %5 = vector.load %arg4[%c0_2, %c0_3] : memref<8x256xbf16, #tpu.memory_space<vmem>>, vector<8x256xbf16>
    %6 = arith.extf %5 : vector<8x256xbf16> to vector<8x256xf32>
    %c0_4 = arith.constant 0 : index
    %c0_5 = arith.constant 0 : index
    %7 = vector.load %arg7[%c0_4, %c0_5] : memref<8x1xf32, #tpu.memory_space<vmem>>, vector<8x1xf32>
    %8 = arith.mulf %4, %6 : vector<8x256xf32>
    %cst = arith.constant dense<0.000000e+00> : vector<8xf32>
    %9 = vector.multi_reduction <add>, %8, %cst [1] : vector<8x256xf32> to vector<8xf32>
    %10 = vector.shape_cast %9 : vector<8xf32> to vector<8x1xf32>
    %11 = arith.addf %7, %10 : vector<8x1xf32>
    %c0_6 = arith.constant 0 : index
    %c0_7 = arith.constant 0 : index
    %12 = vector.load %arg7[%c0_6, %c0_7] : memref<8x1xf32, #tpu.memory_space<vmem>>, vector<8x1xf32>
    tpu.vector_store %arg7[%c0_6, %c0_7], %11 {strides = array<i32>} : memref<8x1xf32, #tpu.memory_space<vmem>>, vector<8x1xf32>,
    %c0_8 = arith.constant 0 : index
    %c0_9 = arith.constant 0 : index
    %13 = vector.load %arg8[%c0_8, %c0_9] : memref<8x1xf32, #tpu.memory_space<vmem>>, vector<8x1xf32>
    %14 = arith.addf %4, %6 : vector<8x256xf32>
    %cst_10 = arith.constant dense<0.000000e+00> : vector<8xf32>
    %15 = vector.multi_reduction <add>, %14, %cst_10 [1] : vector<8x256xf32> to vector<8xf32>
    %16 = vector.shape_cast %15 : vector<8xf32> to vector<8x1xf32>
    %17 = arith.addf %13, %16 : vector<8x1xf32>
    %c0_11 = arith.constant 0 : index
    %c0_12 = arith.constant 0 : index
    %18 = vector.load %arg8[%c0_11, %c0_12] : memref<8x1xf32, #tpu.memory_space<vmem>>, vector<8x1xf32>
    tpu.vector_store %arg8[%c0_11, %c0_12], %17 {strides = array<i32>} : memref<8x1xf32, #tpu.memory_space<vmem>>, vector<8x1xf32>,
    %c0_i32_13 = arith.constant 0 : i32
    %19 = arith.cmpi eq, %arg2, %c0_i32_13 : i32
    %20 = arith.extui %19 : i1 to i32
    %c0_i32_14 = arith.constant 0 : i32
    %21 = arith.cmpi ne, %20, %c0_i32_14 : i32
    scf.if %21 {
      %c0_15 = arith.constant 0 : index
      %c0_16 = arith.constant 0 : index
      %22 = vector.load %arg7[%c0_15, %c0_16] : memref<8x1xf32, #tpu.memory_space<vmem>>, vector<8x1xf32>
      %23 = vector.shape_cast %22 : vector<8x1xf32> to vector<1x8x1xf32>
      %c0_17 = arith.constant 0 : index
      %c0_18 = arith.constant 0 : index
      %c0_19 = arith.constant 0 : index
      %24 = vector.load %arg5[%c0_17, %c0_18, %c0_19] : memref<1x8x1xf32, #tpu.memory_space<vmem>>, vector<1x8x1xf32>
      tpu.vector_store %arg5[%c0_17, %c0_18, %c0_19], %23 {strides = array<i32>} : memref<1x8x1xf32, #tpu.memory_space<vmem>>, vector<1x8x1xf32>,
      %c0_20 = arith.constant 0 : index
      %c0_21 = arith.constant 0 : index
      %25 = vector.load %arg8[%c0_20, %c0_21] : memref<8x1xf32, #tpu.memory_space<vmem>>, vector<8x1xf32>
      %26 = vector.shape_cast %25 : vector<8x1xf32> to vector<1x8x1xf32>
      %c0_22 = arith.constant 0 : index
      %c0_23 = arith.constant 0 : index
      %c0_24 = arith.constant 0 : index
      %27 = vector.load %arg6[%c0_22, %c0_23, %c0_24] : memref<1x8x1xf32, #tpu.memory_space<vmem>>, vector<1x8x1xf32>
      tpu.vector_store %arg6[%c0_22, %c0_23, %c0_24], %26 {strides = array<i32>} : memref<1x8x1xf32, #tpu.memory_space<vmem>>, vector<1x8x1xf32>,
    } else {
    }
    return
  }
  func.func @transform_0(%arg0: i32, %arg1: i32, %arg2: i32) -> (i32, i32) {
    %c1_i32 = arith.constant 1 : i32
    %0 = arith.muli %arg0, %c1_i32 : i32
    %1 = arith.addi %0, %arg2 : i32
    %c0_i32 = arith.constant 0 : i32
    return %arg1, %1 : i32, i32
  }
  func.func @transform_1(%arg0: i32, %arg1: i32, %arg2: i32) -> (i32, i32) {
    %c1_i32 = arith.constant 1 : i32
    %0 = arith.muli %arg0, %c1_i32 : i32
    %1 = arith.addi %0, %arg2 : i32
    %c0_i32 = arith.constant 0 : i32
    return %arg1, %1 : i32, i32
  }
  func.func @transform_2(%arg0: i32, %arg1: i32, %arg2: i32) -> (i32, i32, i32) {
    %c0_i32 = arith.constant 0 : i32
    %c0_i32_0 = arith.constant 0 : i32
    return %arg0, %arg1, %c0_i32 : i32, i32, i32
  }
  func.func @transform_3(%arg0: i32, %arg1: i32, %arg2: i32) -> (i32, i32, i32) {
    %c0_i32 = arith.constant 0 : i32
    %c0_i32_0 = arith.constant 0 : i32
    return %arg0, %arg1, %c0_i32 : i32, i32, i32
  }
}

</mosaic_0001>

<bundles_post_ra>
// kernel: soft_dice_loss.1
= control target key start
LH: loop header
LB: loop body
LE: loop exit
PB: predicated region body
PF: predicated region fallthrough
CT: control target
= control target key end

     0   :  { %vm61_vm0 = vcmask 7168   ;;  %v115_v2 = vmov 0.0   ;;  %s154_s0 = inlined_call_operand.vmem [shape: bf16[8,256], index: 0, kind: input, shape index: {}]   ;;  %s155_s1 = inlined_call_operand.vmem [shape: bf16[8,256], index: 1, kind: input, shape index: {}]   ;;  %s156_s2 = inlined_call_operand.vmem [shape: f32[1,8,1], index: 2, kind: output, shape index: {0}]   ;;  %s157_s3 = inlined_call_operand.vmem [shape: f32[1,8,1], index: 3, kind: output, shape index: {1}]  }
   0x1   :  { %v64_v0 = vld [vmem:[%s154_s0] sm:$0xff]  ;;  %62 = vst.msk [vmem:[#allocation2] sm:$0xff] %vm61_vm0, %v115_v2  ;;  %63 = vst.msk [vmem:[#allocation3] sm:$0xff] %vm61_vm0, %v115_v2 }
   0x2   :  { %v67_v1 = vld [vmem:[%s155_s1] sm:$0xff]  ;;  %v65_v3 = vunpack.c.l.bf16 %v64_v0  ;;  %v66_v4 = vunpack.c.h.bf16 %v64_v0 }
   0x3   :  { %v68_v5 = vunpack.c.l.bf16 %v67_v1  ;;  %v69_v6 = vunpack.c.h.bf16 %v67_v1 }
   0x5   :  { %v71_v7 = vmul.f32 %v68_v5, %v65_v3  ;;  %v72_v8 = vmul.f32 %v69_v6, %v66_v4  ;;  %v80_v9 = vadd.f32 %v68_v5, %v65_v3  ;;  %v81_v10 = vadd.f32 %v69_v6, %v66_v4 }
   0x7   :  { %v73_v11 = vadd.f32 %v72_v8, %v71_v7  ;;  %v82_v12 = vadd.f32 %v81_v10, %v80_v9 }
   0x8   :  { %v70_v13 = vld [vmem:[#allocation2] sm:$0xff]  ;;  %v79_v16 = vld [vmem:[#allocation3] sm:$0xff] }
   0x9   :  { %74 = vadd.xlane.f32.xlu0 %v73_v11 }
   0xd   :  { %83 = vadd.xlane.f32.xlu0 %v82_v12 }
  0x96   :  { %v75_v14 = vpop.xlane.xlu0 %74 }
  0x97   :  { %v76_v15 = vadd.f32 %v75_v14, %v70_v13 }
  0x99   :  { %78 = vst.msk [vmem:[#allocation2] sm:$0xff] %vm61_vm0, %v76_v15 }
  0x9a   :  { %v84_v17 = vpop.xlane.xlu0 %83 }
  0x9b   :  { %v85_v18 = vadd.f32 %v84_v17, %v79_v16 }
  0x9d   :  { %86 = vst.msk [vmem:[#allocation3] sm:$0xff] %vm61_vm0, %v85_v18 }
  0xa0   :  { %v90_v19 = vld [vmem:[#allocation2] sm:$0xff] }
  0xa1   :  { %91 = vst.msk [vmem:[%s156_s2] sm:$0xff] %vm61_vm0, %v90_v19 }
  0xa4   :  { %v92_v20 = vld [vmem:[#allocation3] sm:$0xff] }
  0xa5   :  { %93 = vst.msk [vmem:[%s157_s3] sm:$0xff] %vm61_vm0, %v92_v20 }

</bundles_post_ra>
